<compile_context>
chip_gen: v5e
topology: v5e:2x2
jax: 0.10.0
libtpu: 0.0.40
codegen_flags: <defaults>
</compile_context>

<pallas_src>
import jax
import jax.numpy as jnp
from jax.experimental import pallas as pl
from jax.experimental.pallas import tpu as pltpu


def linear_kernel(x_ref, w_ref, b_ref, o_ref):
    # Linear(1, 1): y = x * w + b elementwise over the lane-dense slab.
    # w_ref / b_ref are (1, 1) scalars in SMEM (scalar load path).
    w = w_ref[0, 0]
    b = b_ref[0, 0]
    o_ref[...] = x_ref[...] * w + b


def linear_forward(x, weight, bias, *, max_tile_rows=512, lanes=128):
    """x: (N, 1) f32, weight: (1, 1) f32, bias: (1,) f32 -> (N, 1) f32.

    Note: for genuinely tiny N the XLA-fused `x * w + b` is strictly faster
    than any kernel launch; the Pallas path is kept here so the kernel itself
    is exercised and pays off once N is large (10^5+ elements).
    """
    n, in_features = x.shape
    assert in_features == 1, "LinearModel uses Linear(1, 1)"

    # ---- Build a lane-dense (rows, 128) slab, padded so the grid divides. ----
    flat = x.reshape(-1)                              # (N,)
    rows = pl.cdiv(n, lanes)
    rows = ((rows + 7) // 8) * 8                      # sublane dim multiple of 8
    tile_rows = max(8, (min(max_tile_rows, rows) // 8) * 8)
    rows = ((rows + tile_rows - 1) // tile_rows) * tile_rows
    padded = rows * lanes
    x_slab = jnp.pad(flat, (0, padded - n)).reshape(rows, lanes)

    grid = (rows // tile_rows,)
    w2d = weight.reshape(1, 1)
    b2d = bias.reshape(1, 1)

    y_slab = pl.pallas_call(
        linear_kernel,
        out_shape=jax.ShapeDtypeStruct((rows, lanes), x.dtype),
        grid=grid,
        in_specs=[
            # Lane-dense x tile, double-buffered by the BlockSpec pipeline.
            pl.BlockSpec((tile_rows, lanes), lambda i: (i, 0)),
            # Scalars in SMEM: no VMEM tile, no per-step DMA.
            pl.BlockSpec(memory_space=pltpu.MemorySpace.SMEM),
            pl.BlockSpec(memory_space=pltpu.MemorySpace.SMEM),
        ],
        out_specs=pl.BlockSpec((tile_rows, lanes), lambda i: (i, 0)),
        compiler_params=pltpu.CompilerParams(
            # Independent output blocks -> parallel (megacore sharding on v7x).
            dimension_semantics=("parallel",),
        ),
    )(x_slab, w2d, b2d)

    # Slice off the padded tail before returning (correctness requirement).
    return y_slab.reshape(-1)[:n].reshape(n, 1)


if __name__ == "__main__":
    key = jax.random.PRNGKey(0)
    kx, kw, kb, kx2 = jax.random.split(key, 4)

    # Deterministic parameters (mimic torch's uniform init range for in=1).
    weight = jax.random.uniform(kw, (1, 1), dtype=jnp.float32, minval=-1.0, maxval=1.0)
    bias = jax.random.uniform(kb, (1,), dtype=jnp.float32, minval=-1.0, maxval=1.0)

    # Small batch of scalar features, consistent with Linear(1, 1).
    x_small = jax.random.normal(kx, (8, 1), dtype=jnp.float32)
    y_small = linear_forward(x_small, weight, bias)
    jax.block_until_ready(y_small)
    ref_small = x_small @ weight.T + bias
    assert jnp.allclose(y_small, ref_small, atol=1e-6), "mismatch (small N)"

    # A second, still-small case that exercises multi-step tiling + padding
    # slice-off (rows=1024, tile_rows=512 -> grid of 2 steps).
    x_big = jax.random.normal(kx2, (130000, 1), dtype=jnp.float32)
    y_big = linear_forward(x_big, weight, bias)
    jax.block_until_ready(y_big)
    ref_big = x_big @ weight.T + bias
    assert jnp.allclose(y_big, ref_big, atol=1e-6), "mismatch (tiled N)"

    print("KERNEL_OK")
</pallas_src>

<mosaic_0001>
module attributes {stable_mosaic.version = 11 : i64} {
  func.func @linear_kernel(%arg0: i32, %arg1: memref<8x128xf32, #tpu.memory_space<vmem>>, %arg2: memref<1x1xf32, #tpu.memory_space<smem>>, %arg3: memref<1x1xf32, #tpu.memory_space<smem>>, %arg4: memref<8x128xf32, #tpu.memory_space<vmem>>) attributes {dimension_semantics = [#tpu.dimension_semantics<parallel>], iteration_bounds = array<i64: 1>, scalar_prefetch = 0 : i64, scratch_operands = 0 : i64, tpu.core_type = #tpu.core_type<tc>, window_params = [{transform_indices = @transform_0, window_bounds = array<i64: 8, 128>}, {transform_indices = @transform_1, window_bounds = array<i64: 1, 1>}, {transform_indices = @transform_2, window_bounds = array<i64: 1, 1>}, {transform_indices = @transform_3, window_bounds = array<i64: 8, 128>}]} {
    %c0 = arith.constant 0 : index
    %c0_0 = arith.constant 0 : index
    %0 = memref.load %arg2[%c0, %c0_0] : memref<1x1xf32, #tpu.memory_space<smem>>
    %c0_1 = arith.constant 0 : index
    %c0_2 = arith.constant 0 : index
    %1 = memref.load %arg3[%c0_1, %c0_2] : memref<1x1xf32, #tpu.memory_space<smem>>
    %c0_3 = arith.constant 0 : index
    %c0_4 = arith.constant 0 : index
    %2 = vector.load %arg1[%c0_3, %c0_4] : memref<8x128xf32, #tpu.memory_space<vmem>>, vector<8x128xf32>
    %3 = vector.broadcast %0 : f32 to vector<8x128xf32>
    %4 = arith.mulf %2, %3 : vector<8x128xf32>
    %5 = vector.broadcast %1 : f32 to vector<8x128xf32>
    %6 = arith.addf %4, %5 : vector<8x128xf32>
    %c0_5 = arith.constant 0 : index
    %c0_6 = arith.constant 0 : index
    %7 = vector.load %arg4[%c0_5, %c0_6] : memref<8x128xf32, #tpu.memory_space<vmem>>, vector<8x128xf32>
    tpu.vector_store %arg4[%c0_5, %c0_6], %6 {strides = array<i32>} : memref<8x128xf32, #tpu.memory_space<vmem>>, vector<8x128xf32>,
    return
  }
  func.func @transform_0(%arg0: i32) -> (i32, i32) {
    %c0_i32 = arith.constant 0 : i32
    %c0_i32_0 = arith.constant 0 : i32
    return %arg0, %c0_i32 : i32, i32
  }
  func.func @transform_1(%arg0: i32) -> (i32, i32) {
    %c0_i32 = arith.constant 0 : i32
    %c0_i32_0 = arith.constant 0 : i32
    %c0_i32_1 = arith.constant 0 : i32
    return %c0_i32, %c0_i32_0 : i32, i32
  }
  func.func @transform_2(%arg0: i32) -> (i32, i32) {
    %c0_i32 = arith.constant 0 : i32
    %c0_i32_0 = arith.constant 0 : i32
    %c0_i32_1 = arith.constant 0 : i32
    return %c0_i32, %c0_i32_0 : i32, i32
  }
  func.func @transform_3(%arg0: i32) -> (i32, i32) {
    %c0_i32 = arith.constant 0 : i32
    %c0_i32_0 = arith.constant 0 : i32
    return %arg0, %c0_i32 : i32, i32
  }
}

</mosaic_0001>

<bundles_post_ra>
// kernel: tpu_custom_call.1
= control target key start
LH: loop header
LB: loop body
LE: loop exit
PB: predicated region body
PF: predicated region fallthrough
CT: control target
= control target key end

     0   :  { %10 = vsyncpa [#allocation5], 0  ;;  %s144_s0 = inlined_call_operand.hbm [shape: f32[8,128], index: 0, kind: input, shape index: {}]   ;;  %s145_s1 = inlined_call_operand.<no memory space> [shape: f32[1,1], index: 1, kind: input, shape index: {}]   ;;  %s146_s2 = inlined_call_operand.<no memory space> [shape: f32[1,1], index: 2, kind: input, shape index: {}]   ;;  %s147_s3 = inlined_call_operand.hbm [shape: f32[8,128], index: 3, kind: output, shape index: {}]  }
   0x1   :  { %11 = vsyncpa [#allocation6], 0  ;;  %s17_s14 = sshll.u32 %s144_s0, 4  ;;  %s110_s15 = smov [#allocation4]   ;;  %s18_s14 = int_to_ptr.hbm [resolvable:$true] %s17_s14 }
   0x2   :  { %s19_s16 = sshll.u32 %s110_s15, 4  ;;  %s20_s16 = int_to_ptr.vmem [resolvable:$true] %s19_s16 }
   0x3   :  { %22 = dma.hbm_to_vmem [thread:$0]  %s18_s14, 128, %s20_s16, [#allocation5]  }
   0x4   :  { %106 = dma.done.wait [#allocation5], 128  }
   0x5   :  { %107 = vsyncadd [#allocation5], 4294967168  ;;  %v34_v0 = vstv %s145_s1  ;;  %v33_v1 = vld [vmem:[#allocation4] sm:$0xff]  ;;  %v36_v2 = vstv %s146_s2  ;;  %s111_s21 = smov [#allocation7]   ;;  %s46_s24 = sshll.u32 %s147_s3, 4  ;;  %s47_s24 = int_to_ptr.hbm [resolvable:$true] %s46_s24 }
   0x6   :  { %s44_s22 = sshll.u32 %s111_s21, 4  ;;  %v35_v3 = vmul.f32 %v34_v0, %v33_v1  ;;  %s45_s22 = int_to_ptr.vmem [resolvable:$true] %s44_s22 }
   0x8   :  { %v37_v4 = vadd.f32 %v36_v2, %v35_v3 }
   0xa   :  { %38 = vst [vmem:[#allocation7] sm:$0xff] %v37_v4 }
   0xb   :  { %49 = dma.vmem_to_hbm [thread:$0]  %s45_s22, 128, %s47_s24, [#allocation6]  }
   0xc   :  { %108 = dma.done.wait [#allocation6], 128  }
   0xd   :  { %109 = vsyncadd [#allocation6], 4294967168 }
   0xe   :  { %54 = vsyncpa [#allocation5], 1 }
   0xf   :  { %55 = vsyncpa [#allocation6], 1 }

</bundles_post_ra>
